<compile_context>
chip_gen: v7x
topology: tpu7x:2x2x1
jax: 0.10.0
libtpu: 0.0.40
codegen_flags: <defaults>
</compile_context>

<pallas_src>
import jax
import jax.numpy as jnp
from jax.experimental import pallas as pl
from jax.experimental.pallas import tpu as pltpu


def _round_up(x, m):
    return ((x + m - 1) // m) * m


def _choose_tiling(nc, hw):
    """Pick fold factor S and tile sizes (tm, tk, acc_w) for a (nc, hw) problem."""
    # Fold HW into rows so tiles stay fat and the parallel axis has >=2 tiles,
    # while the lane (column) extent stays >= 2048.
    S = 1
    while nc * S < 2048 and hw % (2 * S) == 0 and hw // (2 * S) >= 2048:
        S *= 2
    rows, cols = nc * S, hw // S

    # Row tile: <= 256 sublanes, balanced across row tiles, multiple of 8
    # (or the full extent, which is always legal).
    row_tiles = pl.cdiv(rows, 256)
    tm = _round_up(pl.cdiv(rows, row_tiles), 8)
    if tm >= rows:
        tm = rows

    # Column tile: <= 2048 lanes, multiple of 128 (or full extent).
    if cols <= 2048:
        tk = cols
    else:
        col_tiles = pl.cdiv(cols, 2048)
        tk = min(2048, _round_up(pl.cdiv(cols, col_tiles), 128))

    acc_w = 128 if tk % 128 == 0 else tk
    return S, rows, cols, tm, tk, acc_w


def _make_kernel(cols, tm, tk, acc_w):
    col_ragged = (cols % tk) != 0
    nfold = tk // acc_w

    def kernel(pred_ref, targ_ref, out_ref, acc_pt, acc_p, acc_t, acc_b):
        k = pl.program_id(1)

        @pl.when(k == 0)
        def _():
            acc_pt[...] = jnp.zeros_like(acc_pt)
            acc_p[...] = jnp.zeros_like(acc_p)
            acc_t[...] = jnp.zeros_like(acc_t)
            acc_b[...] = jnp.zeros_like(acc_b)

        x = pred_ref[...].astype(jnp.float32)   # logits  (tm, tk)
        t = targ_ref[...].astype(jnp.float32)   # targets (tm, tk)

        if col_ragged:
            # Only the last column tile is ragged; masked elements contribute
            # exactly 0 to every partial sum (p -> 0, bce -> 0).
            limit = cols - k * tk
            col_ids = jax.lax.broadcasted_iota(jnp.int32, (tm, tk), 1)
            valid = col_ids < limit
            x = jnp.where(valid, x, -1e9)
            t = jnp.where(valid, t, 0.0)

        # sigmoid(x) = 0.5 + 0.5*tanh(0.5*x): one EUP tanh, no reciprocal/select.
        p = 0.5 + 0.5 * jnp.tanh(0.5 * x)

        # Numerically-stable BCE-with-logits: max(x,0) - x*t + log1p(exp(-|x|)).
        bce = jnp.maximum(x, 0.0) - x * t + jnp.log1p(jnp.exp(-jnp.abs(x)))

        def fold(v):
            # (tm, tk) -> (tm, acc_w): pure vreg adds over static 128-lane
            # slices; the expensive cross-lane reduce is deferred to k == last.
            out = v[:, 0:acc_w]
            for j in range(1, nfold):
                out = out + v[:, j * acc_w:(j + 1) * acc_w]
            return out

        acc_pt[...] += fold(p * t)
        acc_p[...] += fold(p)
        acc_t[...] += fold(t)
        acc_b[...] += fold(bce)

        @pl.when(k == pl.num_programs(1) - 1)
        def _():
            out_ref[...] = jnp.concatenate(
                [
                    jnp.sum(acc_pt[...], axis=-1, keepdims=True),
                    jnp.sum(acc_p[...], axis=-1, keepdims=True),
                    jnp.sum(acc_t[...], axis=-1, keepdims=True),
                    jnp.sum(acc_b[...], axis=-1, keepdims=True),
                ],
                axis=-1,
            )

    return kernel


def combo_loss(pred, target, weight_bce=0.5, smooth=1e-5):
    """pred, target: (N, C, H, W).  Any float/int dtype; cast to f32 in-kernel.

    Feeding bf16 logits / int8 targets halves HBM traffic with no accuracy
    change (all math is f32 inside the kernel).
    """
    n, c, h, w = pred.shape
    nc, hw = n * c, h * w

    S, rows, cols, tm, tk, acc_w = _choose_tiling(nc, hw)

    # Contiguous reshape (no copy): fold S segments of HW into the row axis.
    pred2d = pred.reshape(rows, cols)
    targ2d = target.reshape(rows, cols)

    grid = (pl.cdiv(rows, tm), pl.cdiv(cols, tk))

    sums = pl.pallas_call(
        _make_kernel(cols, tm, tk, acc_w),
        out_shape=jax.ShapeDtypeStruct((rows, 4), jnp.float32),
        grid=grid,
        in_specs=[
            pl.BlockSpec((tm, tk), lambda i, k: (i, k)),
            pl.BlockSpec((tm, tk), lambda i, k: (i, k)),
        ],
        out_specs=pl.BlockSpec((tm, 4), lambda i, k: (i, 0)),
        scratch_shapes=[pltpu.VMEM((tm, acc_w), jnp.float32) for _ in range(4)],
        compiler_params=pltpu.CompilerParams(
            dimension_semantics=("parallel", "arbitrary"),
            vmem_limit_bytes=32 * 1024 * 1024,
        ),
    )(pred2d, targ2d)

    # Tiny JAX epilogue: undo the HW fold, then combine the per-(n,c) partials.
    sums = sums.reshape(nc, S, 4).sum(axis=1)
    inter = sums[:, 0]
    psum = sums[:, 1]
    tsum = sums[:, 2]
    bce_row = sums[:, 3]

    loss_bce = jnp.sum(bce_row) / (nc * hw)                        # mean over all elems
    dice = 1.0 - (2.0 * inter + smooth) / (psum + tsum + smooth)   # (N*C,)
    loss_dice = jnp.mean(dice)                                     # mean over (N, C)

    return weight_bce * loss_bce + (1.0 - weight_bce) * loss_dice


if __name__ == "__main__":
    key = jax.random.PRNGKey(0)
    k_pred, k_targ = jax.random.split(key)

    N, C, H, W = 2, 4, 16, 16
    pred = jax.random.normal(k_pred, (N, C, H, W), dtype=jnp.float32)
    target = (jax.random.uniform(k_targ, (N, C, H, W)) > 0.5).astype(jnp.float32)

    loss = combo_loss(pred, target, weight_bce=0.5)
    loss = jax.block_until_ready(loss)

    # Pure-JAX reference (matches the PyTorch ComboLoss forward).
    p = jax.nn.sigmoid(pred)
    inter = (p * target).sum(axis=(2, 3))
    union = p.sum(axis=(2, 3)) + target.sum(axis=(2, 3))
    dice_ref = jnp.mean(1.0 - (2.0 * inter + 1e-5) / (union + 1e-5))
    bce_ref = jnp.mean(
        jnp.maximum(pred, 0.0) - pred * target + jnp.log1p(jnp.exp(-jnp.abs(pred)))
    )
    ref = 0.5 * bce_ref + 0.5 * dice_ref

    # Tolerance accounts for EUP transcendental (tanh/exp/log) approximation
    # differences between the Mosaic kernel and the XLA reference.
    assert jnp.allclose(loss, ref, atol=1e-3, rtol=1e-3), (loss, ref)

    print("KERNEL_OK")
</pallas_src>

<mosaic_0001>
module attributes {stable_mosaic.version = 11 : i64} {
  func.func @kernel(%arg0: i32, %arg1: i32, %arg2: memref<8x256xf32, #tpu.memory_space<vmem>>, %arg3: memref<8x256xf32, #tpu.memory_space<vmem>>, %arg4: memref<8x4xf32, #tpu.memory_space<vmem>>, %arg5: memref<8x128xf32, #tpu.memory_space<vmem>>, %arg6: memref<8x128xf32, #tpu.memory_space<vmem>>, %arg7: memref<8x128xf32, #tpu.memory_space<vmem>>, %arg8: memref<8x128xf32, #tpu.memory_space<vmem>>) attributes {dimension_semantics = [#tpu.dimension_semantics<parallel>, #tpu.dimension_semantics<arbitrary>], iteration_bounds = array<i64: 1, 1>, scalar_prefetch = 0 : i64, scratch_operands = 4 : i64, tpu.core_type = #tpu.core_type<tc>, window_params = [{transform_indices = @transform_0, window_bounds = array<i64: 8, 256>}, {transform_indices = @transform_1, window_bounds = array<i64: 8, 256>}, {transform_indices = @transform_2, window_bounds = array<i64: 8, 4>}]} {
    %c0_i32 = arith.constant 0 : i32
    %0 = arith.cmpi eq, %arg1, %c0_i32 : i32
    %1 = arith.extui %0 : i1 to i32
    %c0_i32_0 = arith.constant 0 : i32
    %2 = arith.cmpi ne, %1, %c0_i32_0 : i32
    scf.if %2 {
      %cst_26 = arith.constant 0.000000e+00 : f32
      %50 = vector.broadcast %cst_26 : f32 to vector<8x128xf32>
      %c0_27 = arith.constant 0 : index
      %c0_28 = arith.constant 0 : index
      %51 = vector.load %arg5[%c0_27, %c0_28] : memref<8x128xf32, #tpu.memory_space<vmem>>, vector<8x128xf32>
      tpu.vector_store %arg5[%c0_27, %c0_28], %50 {strides = array<i32>} : memref<8x128xf32, #tpu.memory_space<vmem>>, vector<8x128xf32>,
      %cst_29 = arith.constant 0.000000e+00 : f32
      %52 = vector.broadcast %cst_29 : f32 to vector<8x128xf32>
      %c0_30 = arith.constant 0 : index
      %c0_31 = arith.constant 0 : index
      %53 = vector.load %arg6[%c0_30, %c0_31] : memref<8x128xf32, #tpu.memory_space<vmem>>, vector<8x128xf32>
      tpu.vector_store %arg6[%c0_30, %c0_31], %52 {strides = array<i32>} : memref<8x128xf32, #tpu.memory_space<vmem>>, vector<8x128xf32>,
      %cst_32 = arith.constant 0.000000e+00 : f32
      %54 = vector.broadcast %cst_32 : f32 to vector<8x128xf32>
      %c0_33 = arith.constant 0 : index
      %c0_34 = arith.constant 0 : index
      %55 = vector.load %arg7[%c0_33, %c0_34] : memref<8x128xf32, #tpu.memory_space<vmem>>, vector<8x128xf32>
      tpu.vector_store %arg7[%c0_33, %c0_34], %54 {strides = array<i32>} : memref<8x128xf32, #tpu.memory_space<vmem>>, vector<8x128xf32>,
      %cst_35 = arith.constant 0.000000e+00 : f32
      %56 = vector.broadcast %cst_35 : f32 to vector<8x128xf32>
      %c0_36 = arith.constant 0 : index
      %c0_37 = arith.constant 0 : index
      %57 = vector.load %arg8[%c0_36, %c0_37] : memref<8x128xf32, #tpu.memory_space<vmem>>, vector<8x128xf32>
      tpu.vector_store %arg8[%c0_36, %c0_37], %56 {strides = array<i32>} : memref<8x128xf32, #tpu.memory_space<vmem>>, vector<8x128xf32>,
    } else {
    }
    %c0 = arith.constant 0 : index
    %c0_1 = arith.constant 0 : index
    %3 = vector.load %arg2[%c0, %c0_1] : memref<8x256xf32, #tpu.memory_space<vmem>>, vector<8x256xf32>
    %c0_2 = arith.constant 0 : index
    %c0_3 = arith.constant 0 : index
    %4 = vector.load %arg3[%c0_2, %c0_3] : memref<8x256xf32, #tpu.memory_space<vmem>>, vector<8x256xf32>
    %cst = arith.constant 5.000000e-01 : f32
    %5 = vector.broadcast %cst : f32 to vector<8x256xf32>
    %6 = arith.mulf %5, %3 : vector<8x256xf32>
    %7 = math.tanh %6 : vector<8x256xf32>
    %cst_4 = arith.constant 5.000000e-01 : f32
    %8 = vector.broadcast %cst_4 : f32 to vector<8x256xf32>
    %9 = arith.mulf %8, %7 : vector<8x256xf32>
    %cst_5 = arith.constant 5.000000e-01 : f32
    %10 = vector.broadcast %cst_5 : f32 to vector<8x256xf32>
    %11 = arith.addf %10, %9 : vector<8x256xf32>
    %cst_6 = arith.constant 0.000000e+00 : f32
    %12 = vector.broadcast %cst_6 : f32 to vector<8x256xf32>
    %13 = arith.maximumf %3, %12 : vector<8x256xf32>
    %14 = arith.mulf %3, %4 : vector<8x256xf32>
    %15 = arith.subf %13, %14 : vector<8x256xf32>
    %16 = math.absf %3 : vector<8x256xf32>
    %cst_7 = arith.constant 0.000000e+00 : f32
    %17 = vector.broadcast %cst_7 : f32 to vector<8x256xf32>
    %18 = arith.subf %17, %16 : vector<8x256xf32>
    %19 = math.exp %18 : vector<8x256xf32>
    %20 = math.log1p %19 : vector<8x256xf32>
    %21 = arith.addf %15, %20 : vector<8x256xf32>
    %c0_8 = arith.constant 0 : index
    %c0_9 = arith.constant 0 : index
    %22 = vector.load %arg5[%c0_8, %c0_9] : memref<8x128xf32, #tpu.memory_space<vmem>>, vector<8x128xf32>
    %23 = arith.mulf %11, %4 : vector<8x256xf32>
    %24 = vector.extract_strided_slice %23 {offsets = [0, 0], sizes = [8, 128], strides = [1, 1]} : vector<8x256xf32> to vector<8x128xf32>
    %25 = vector.extract_strided_slice %23 {offsets = [0, 128], sizes = [8, 128], strides = [1, 1]} : vector<8x256xf32> to vector<8x128xf32>
    %26 = arith.addf %24, %25 : vector<8x128xf32>
    %27 = arith.addf %22, %26 : vector<8x128xf32>
    %c0_10 = arith.constant 0 : index
    %c0_11 = arith.constant 0 : index
    %28 = vector.load %arg5[%c0_10, %c0_11] : memref<8x128xf32, #tpu.memory_space<vmem>>, vector<8x128xf32>
    tpu.vector_store %arg5[%c0_10, %c0_11], %27 {strides = array<i32>} : memref<8x128xf32, #tpu.memory_space<vmem>>, vector<8x128xf32>,
    %c0_12 = arith.constant 0 : index
    %c0_13 = arith.constant 0 : index
    %29 = vector.load %arg6[%c0_12, %c0_13] : memref<8x128xf32, #tpu.memory_space<vmem>>, vector<8x128xf32>
    %30 = vector.extract_strided_slice %11 {offsets = [0, 0], sizes = [8, 128], strides = [1, 1]} : vector<8x256xf32> to vector<8x128xf32>
    %31 = vector.extract_strided_slice %11 {offsets = [0, 128], sizes = [8, 128], strides = [1, 1]} : vector<8x256xf32> to vector<8x128xf32>
    %32 = arith.addf %30, %31 : vector<8x128xf32>
    %33 = arith.addf %29, %32 : vector<8x128xf32>
    %c0_14 = arith.constant 0 : index
    %c0_15 = arith.constant 0 : index
    %34 = vector.load %arg6[%c0_14, %c0_15] : memref<8x128xf32, #tpu.memory_space<vmem>>, vector<8x128xf32>
    tpu.vector_store %arg6[%c0_14, %c0_15], %33 {strides = array<i32>} : memref<8x128xf32, #tpu.memory_space<vmem>>, vector<8x128xf32>,
    %c0_16 = arith.constant 0 : index
    %c0_17 = arith.constant 0 : index
    %35 = vector.load %arg7[%c0_16, %c0_17] : memref<8x128xf32, #tpu.memory_space<vmem>>, vector<8x128xf32>
    %36 = vector.extract_strided_slice %4 {offsets = [0, 0], sizes = [8, 128], strides = [1, 1]} : vector<8x256xf32> to vector<8x128xf32>
    %37 = vector.extract_strided_slice %4 {offsets = [0, 128], sizes = [8, 128], strides = [1, 1]} : vector<8x256xf32> to vector<8x128xf32>
    %38 = arith.addf %36, %37 : vector<8x128xf32>
    %39 = arith.addf %35, %38 : vector<8x128xf32>
    %c0_18 = arith.constant 0 : index
    %c0_19 = arith.constant 0 : index
    %40 = vector.load %arg7[%c0_18, %c0_19] : memref<8x128xf32, #tpu.memory_space<vmem>>, vector<8x128xf32>
    tpu.vector_store %arg7[%c0_18, %c0_19], %39 {strides = array<i32>} : memref<8x128xf32, #tpu.memory_space<vmem>>, vector<8x128xf32>,
    %c0_20 = arith.constant 0 : index
    %c0_21 = arith.constant 0 : index
    %41 = vector.load %arg8[%c0_20, %c0_21] : memref<8x128xf32, #tpu.memory_space<vmem>>, vector<8x128xf32>
    %42 = vector.extract_strided_slice %21 {offsets = [0, 0], sizes = [8, 128], strides = [1, 1]} : vector<8x256xf32> to vector<8x128xf32>
    %43 = vector.extract_strided_slice %21 {offsets = [0, 128], sizes = [8, 128], strides = [1, 1]} : vector<8x256xf32> to vector<8x128xf32>
    %44 = arith.addf %42, %43 : vector<8x128xf32>
    %45 = arith.addf %41, %44 : vector<8x128xf32>
    %c0_22 = arith.constant 0 : index
    %c0_23 = arith.constant 0 : index
    %46 = vector.load %arg8[%c0_22, %c0_23] : memref<8x128xf32, #tpu.memory_space<vmem>>, vector<8x128xf32>
    tpu.vector_store %arg8[%c0_22, %c0_23], %45 {strides = array<i32>} : memref<8x128xf32, #tpu.memory_space<vmem>>, vector<8x128xf32>,
    %c0_i32_24 = arith.constant 0 : i32
    %47 = arith.cmpi eq, %arg1, %c0_i32_24 : i32
    %48 = arith.extui %47 : i1 to i32
    %c0_i32_25 = arith.constant 0 : i32
    %49 = arith.cmpi ne, %48, %c0_i32_25 : i32
    scf.if %49 {
      %c0_26 = arith.constant 0 : index
      %c0_27 = arith.constant 0 : index
      %50 = vector.load %arg5[%c0_26, %c0_27] : memref<8x128xf32, #tpu.memory_space<vmem>>, vector<8x128xf32>
      %cst_28 = arith.constant dense<0.000000e+00> : vector<8xf32>
      %51 = vector.multi_reduction <add>, %50, %cst_28 [1] : vector<8x128xf32> to vector<8xf32>
      %52 = vector.shape_cast %51 : vector<8xf32> to vector<8x1xf32>
      %c0_29 = arith.constant 0 : index
      %c0_30 = arith.constant 0 : index
      %53 = vector.load %arg6[%c0_29, %c0_30] : memref<8x128xf32, #tpu.memory_space<vmem>>, vector<8x128xf32>
      %cst_31 = arith.constant dense<0.000000e+00> : vector<8xf32>
      %54 = vector.multi_reduction <add>, %53, %cst_31 [1] : vector<8x128xf32> to vector<8xf32>
      %55 = vector.shape_cast %54 : vector<8xf32> to vector<8x1xf32>
      %c0_32 = arith.constant 0 : index
      %c0_33 = arith.constant 0 : index
      %56 = vector.load %arg7[%c0_32, %c0_33] : memref<8x128xf32, #tpu.memory_space<vmem>>, vector<8x128xf32>
      %cst_34 = arith.constant dense<0.000000e+00> : vector<8xf32>
      %57 = vector.multi_reduction <add>, %56, %cst_34 [1] : vector<8x128xf32> to vector<8xf32>
      %58 = vector.shape_cast %57 : vector<8xf32> to vector<8x1xf32>
      %c0_35 = arith.constant 0 : index
      %c0_36 = arith.constant 0 : index
      %59 = vector.load %arg8[%c0_35, %c0_36] : memref<8x128xf32, #tpu.memory_space<vmem>>, vector<8x128xf32>
      %cst_37 = arith.constant dense<0.000000e+00> : vector<8xf32>
      %60 = vector.multi_reduction <add>, %59, %cst_37 [1] : vector<8x128xf32> to vector<8xf32>
      %61 = vector.shape_cast %60 : vector<8xf32> to vector<8x1xf32>
      %62 = tpu.concatenate %52, %55, %58, %61 in 1 : vector<8x1xf32>, vector<8x1xf32>, vector<8x1xf32>, vector<8x1xf32> -> vector<8x4xf32>
      %c0_38 = arith.constant 0 : index
      %c0_39 = arith.constant 0 : index
      %63 = vector.load %arg4[%c0_38, %c0_39] : memref<8x4xf32, #tpu.memory_space<vmem>>, vector<8x4xf32>
      tpu.vector_store %arg4[%c0_38, %c0_39], %62 {strides = array<i32>} : memref<8x4xf32, #tpu.memory_space<vmem>>, vector<8x4xf32>,
    } else {
    }
    return
  }
  func.func @transform_0(%arg0: i32, %arg1: i32) -> (i32, i32) {
    %c0_i32 = arith.constant 0 : i32
    return %arg0, %arg1 : i32, i32
  }
  func.func @transform_1(%arg0: i32, %arg1: i32) -> (i32, i32) {
    %c0_i32 = arith.constant 0 : i32
    return %arg0, %arg1 : i32, i32
  }
  func.func @transform_2(%arg0: i32, %arg1: i32) -> (i32, i32) {
    %c0_i32 = arith.constant 0 : i32
    %c0_i32_0 = arith.constant 0 : i32
    return %arg0, %c0_i32 : i32, i32
  }
}

</mosaic_0001>

<bundles_post_ra>
// kernel: tpu_custom_call.1
= control target key start
LH: loop header
LB: loop body
LE: loop exit
PB: predicated region body
PF: predicated region fallthrough
CT: control target
= control target key end

     0   :  { %7 = vsyncpa [#allocation7], 0  ;;  %s242_s0 = inlined_call_operand.hbm [shape: f32[8,256], index: 0, kind: input, shape index: {}]   ;;  %s243_s1 = inlined_call_operand.hbm [shape: f32[8,256], index: 1, kind: input, shape index: {}]   ;;  %s244_s2 = inlined_call_operand.vmem [shape: f32[8,4], index: 2, kind: output, shape index: {}]  }
   0x1   :  { %8 = vsyncpa [#allocation9], 0  ;;  %s198_s9 = smov [#allocation6]   ;;  %s199_s11 = smov [#allocation8]  }
   0x2   :  { %s15_s10 = sshll.u32 %s198_s9, 4  ;;  %s25_s12 = sshll.u32 %s199_s11, 4  ;;  %s16_s10 = int_to_ptr.vmem [resolvable:$true] %s15_s10  ;;  %s26_s12 = int_to_ptr.vmem [resolvable:$true] %s25_s12 }
   0x3   :  { %s150_s15 = scalar_lea.hbm %s242_s0, 256 }
   0x4   :  { %p151_p0 = scmp.ne.s32.totalorder %s242_s0, %s150_s15  ;;  %p154_p1 = scmp.lt.u32.totalorder %s150_s15, %s242_s0 }
   0x6   :  { %p156_p2 = pnand %p154_p1, %p151_p0 }
   0x8   :  { %159 = shalt.err (!%p156_p2)
}
   0x9   :  { %s160_s20 = scalar_lea.vmem %s16_s10, 256  ;;  %p165_p4 = scmp.lt.s32.totalorder %s16_s10, %s16_s10 }
   0xa   :  { %p161_p3 = scmp.ne.s32.totalorder %s16_s10, %s160_s20  ;;  %p166_p5 = scmp.lt.s32.totalorder %s160_s20, %s160_s20 }
   0xc   :  { %p167_p6 = por %p166_p5, %p165_p4 }
   0xe   :  { %p168_p7 = pnand %p167_p6, %p161_p3 }
  0x10   :  { %171 = shalt.err (!%p168_p7)
}
  0x11   :  { %18 = dma.hbm_to_vmem [thread:$0]  %s242_s0, 256, %s16_s10, [#allocation7]  }
  0x12   :  { %s172_s25 = scalar_lea.hbm %s243_s1, 256 }
  0x13   :  { %p173_p8 = scmp.ne.s32.totalorder %s243_s1, %s172_s25  ;;  %p176_p9 = scmp.lt.u32.totalorder %s172_s25, %s243_s1 }
  0x15   :  { %p178_p10 = pnand %p176_p9, %p173_p8 }
  0x17   :  { %181 = shalt.err (!%p178_p10)
}
  0x18   :  { %s182_s30 = scalar_lea.vmem %s26_s12, 256  ;;  %p187_p12 = scmp.lt.s32.totalorder %s26_s12, %s26_s12 }
  0x19   :  { %p183_p11 = scmp.ne.s32.totalorder %s26_s12, %s182_s30  ;;  %p188_p13 = scmp.lt.s32.totalorder %s182_s30, %s182_s30 }
  0x1b   :  { %p189_p0 = por %p188_p13, %p187_p12 }
  0x1d   :  { %p190_p1 = pnand %p189_p0, %p183_p11 }
  0x1f   :  { %193 = shalt.err (!%p190_p1)
}
  0x20   :  { %28 = dma.hbm_to_vmem [thread:$0]  %s243_s1, 256, %s26_s12, [#allocation9]  }
  0x21   :  { %194 = dma.done.wait [#allocation7], 256  }
  0x22   :  { %195 = vsyncadd [#allocation7], 4294967040 }
  0x23   :  { %196 = dma.done.wait [#allocation9], 256  }
  0x24   :  { %197 = vsyncadd [#allocation9], 4294967040  ;;  %v43_v0 = vld [vmem:[#allocation6] sm:$0xff]  ;;  %v44_v1 = vld [vmem:[#allocation6 + $0x8] sm:$0xff]  ;;  %vm122_vm2 = vcmask 7168   ;;  %vm124_vm3 = vcmask 15360  }
  0x25   :  { %v45_v2 = vld [vmem:[#allocation8] sm:$0xff]  ;;  %v46_v3 = vld [vmem:[#allocation8 + $0x8] sm:$0xff]  ;;  %v47_v4 = vmul.f32 0.5, %v43_v0  ;;  %v48_v5 = vmul.f32 0.5, %v44_v1  ;;  %v61_v6 = vand.u32 2147483647, %v43_v0 }
  0x26   :  { %v62_v7 = vand.u32 2147483647, %v44_v1  ;;  %v100_v8 = vadd.f32 %v46_v3, %v45_v2  ;;  %v57_v30 = vmul.f32 %v45_v2, %v43_v0  ;;  %v55_v31 = vmax.f32 %v43_v0, 0.0 }
  0x27   :  { %138 = vtanh.f32 %v47_v4  ;;  %v63_v9 = vsub.f32 0.0, %v61_v6  ;;  %v58_v34 = vmul.f32 %v46_v3, %v44_v1  ;;  %v56_v35 = vmax.f32 %v44_v1, 0.0 }
  0x28   :  { %140 = vtanh.f32 %v48_v5  ;;  %v64_v10 = vsub.f32 0.0, %v62_v7  ;;  %117 = vadd.xlane.f32.xlu1 %v100_v8  ;;  %v59_v39 = vsub.f32 %v55_v31, %v57_v30  ;;  %vm126_vm4 = vcmask 23552  }
  0x29   :  { %v65_v11 = vmul.f32 1.442695, %v63_v9  ;;  %v60_v42 = vsub.f32 %v56_v35, %v58_v34  ;;  %vm128_vm5 = vcmask 31744  }
  0x2a   :  { %v67_v12 = vmul.f32 1.442695, %v64_v10 }
  0x2b   :  { %142 = vpow2.f32 %v65_v11 }
  0x2c   :  { %144 = vpow2.f32 %v67_v12 }
  0x31   :  { %v139_v13 = vpop.eup %138 }
  0x32   :  { %v141_v14 = vpop.eup %140  ;;  %v51_v15 = vmul.f32 0.5, %v139_v13 }
  0x33   :  { %v52_v16 = vmul.f32 0.5, %v141_v14 }
  0x34   :  { %v53_v17 = vadd.f32 0.5, %v51_v15 }
  0x35   :  { %v143_v18 = vpop.eup %142  ;;  %v54_v19 = vadd.f32 0.5, %v52_v16 }
  0x36   :  { %v145_v20 = vpop.eup %144  ;;  %v90_v21 = vmul.f32 %v53_v17, %v45_v2  ;;  %v69_v22 = vadd.f32 1.0, %v143_v18  ;;  %v72_v26 = vmul.f32 -0.5, %v143_v18  ;;  %v75_v32 = vand.u32 2147483647, %v143_v18 }
  0x37   :  { %v91_v23 = vmul.f32 %v54_v19, %v46_v3  ;;  %v78_v24 = vadd.f32 1.0, %v145_v20  ;;  %v81_v27 = vmul.f32 -0.5, %v145_v20  ;;  %v96_v28 = vadd.f32 %v54_v19, %v53_v17 }
  0x38   :  { %146 = vlog2.f32 %v69_v22  ;;  %v73_v29 = vadd.f32 1.0, %v72_v26  ;;  %v84_v36 = vand.u32 2147483647, %v145_v20  ;;  %vm76_vm0 = vcmp.lt.f32.partialorder %v75_v32, 0.0004427343 }
  0x39   :  { %v92_v25 = vadd.f32 %v91_v23, %v90_v21  ;;  %148 = vlog2.f32 %v78_v24  ;;  %v82_v33 = vadd.f32 1.0, %v81_v27 }
  0x3a   :  { %v74_v37 = vmul.f32 %v143_v18, %v73_v29  ;;  %vm85_vm1 = vcmp.lt.f32.partialorder %v84_v36, 0.0004427343 }
  0x3b   :  { %111 = vadd.xlane.f32.xlu0 %v92_v25  ;;  %v83_v40 = vmul.f32 %v145_v20, %v82_v33 }
  0x3f   :  { %114 = vadd.xlane.f32.xlu0 %v96_v28 }
  0x42   :  { %v147_v38 = vpop.eup %146 }
  0x43   :  { %v149_v41 = vpop.eup %148  ;;  %v71_v43 = vmul.f32 0.6931472, %v147_v38 }
  0x44   :  { %v80_v44 = vmul.f32 0.6931472, %v149_v41 }
  0x45   :  { %v77_v45 = vsel %vm76_vm0, %v74_v37, %v71_v43 }
  0x46   :  { %v86_v46 = vsel %vm85_vm1, %v83_v40, %v80_v44  ;;  %v87_v47 = vadd.f32 %v77_v45, %v59_v39 }
  0x47   :  { %v88_v48 = vadd.f32 %v86_v46, %v60_v42 }
  0x49   :  { %v104_v49 = vadd.f32 %v88_v48, %v87_v47 }
  0x4b   :  { %120 = vadd.xlane.f32.xlu1 %v104_v49 }
  0xb5   :  { %v118_v52 = vpop.xlane.xlu1 %117 }
  0xc8   :  { %v112_v50 = vpop.xlane.xlu0 %111 }
  0xcc   :  { %v115_v51 = vpop.xlane.xlu0 %114 }
  0xcd   :  { %v123_v53 = vsel %vm122_vm2, %v112_v50, %v115_v51 }
  0xce   :  { %v125_v54 = vsel %vm124_vm3, %v123_v53, %v118_v52 }
  0xd8   :  { %v121_v55 = vpop.xlane.xlu1 %120 }
  0xd9   :  { %v127_v56 = vsel %vm126_vm4, %v125_v54, %v121_v55 }
  0xda   :  { %129 = vst.msk [vmem:[%s244_s2] sm:$0xff] %vm128_vm5, %v127_v56 }
  0xdb   :  { %134 = vsyncpa [#allocation7], 1 }
  0xdc   :  { %135 = vsyncpa [#allocation9], 1 }

</bundles_post_ra>
